<compile_context>
chip_gen: v7x
topology: tpu7x:2x2x1
jax: 0.10.0
libtpu: 0.0.40
codegen_flags: <defaults>
</compile_context>

<pallas_src>
import math

import jax
import jax.numpy as jnp
from jax.experimental import pallas as pl
from jax.experimental.pallas import tpu as pltpu


def _round_up(x, m):
    return (x + m - 1) // m * m


def _gelu_tanh(x):
    # PyTorch F.gelu(x, approximate='tanh'), computed in f32 (EUP tanh).
    c = math.sqrt(2.0 / math.pi)
    return 0.5 * x * (1.0 + jnp.tanh(c * (x + 0.044715 * x * x * x)))


def _vmem_capacity_bytes():
    try:
        return int(pltpu.get_tpu_info().vmem_capacity_bytes)
    except Exception:
        return 64 * 1024 * 1024  # conservative default (v7x per-TensorCore VMEM)


def _num_cores_guess():
    # Megacore chips (v4, v7x) expose two TensorCores per device; keep >=2
    # token tiles there so the "parallel" axis actually uses both cores.
    try:
        kind = jax.devices()[0].device_kind.lower()
    except Exception:
        return 1
    return 2 if ("v4" in kind or "v7" in kind or "7x" in kind) else 1


def _choose_token_tile(m, tm_cap, num_cores):
    """Pick (tm, m_pad): tm a multiple of 128 for m>=128 (>=16 below), minimal
    token-padding waste, preferring >= num_cores tiles (megacore), then the
    largest tile at equal padding."""
    if m <= 128:
        tm = max(16, _round_up(m, 16))
        return tm, tm
    tm_cap = max(128, min(tm_cap // 128 * 128, _round_up(m, 128)))
    best_key, best = None, (128, _round_up(m, 128))
    tm = 128
    while tm <= tm_cap:
        m_pad = _round_up(m, tm)
        n_tiles = m_pad // tm
        mc_penalty = 1 if (num_cores > 1 and n_tiles < num_cores) else 0
        key = (mc_penalty, m_pad, -tm)
        if best_key is None or key < best_key:
            best_key, best = key, (tm, m_pad)
        tm += 128
    return best


# ----------------------------- kernels ------------------------------------- #


def mlp_resident_kernel(x_ref, w1_ref, b1_ref, w2_ref, b2_ref, o_ref):
    # Both weight matrices are VMEM-resident (constant index_map); one pass per
    # token tile: fc1 -> self-gated gelu -> fc2, all slabs stay on-chip.
    h = jnp.dot(x_ref[...], w1_ref[...], preferred_element_type=jnp.float32)
    h = h + b1_ref[...]
    fused = _gelu_tanh(h) * h                      # gate * up == gelu(h) * h
    out = jnp.dot(fused.astype(w2_ref.dtype), w2_ref[...],
                  preferred_element_type=jnp.float32)
    o_ref[...] = (out + b2_ref[...]).astype(o_ref.dtype)


def mlp_reduction_kernel(x_ref, w1_ref, b1_ref, w2_ref, b2_ref, o_ref, acc_ref):
    j = pl.program_id(1)
    last = pl.num_programs(1) - 1

    # fc1 slab (tm, th) in f32 (bf16 MXU inputs, f32 accumulation).
    h = jnp.dot(x_ref[...], w1_ref[...], preferred_element_type=jnp.float32)
    h = h + b1_ref[...]
    fused = _gelu_tanh(h) * h                      # gate * up == gelu(h) * h
    # fc2 partial product for this hidden slab.
    partial = jnp.dot(fused.astype(w2_ref.dtype), w2_ref[...],
                      preferred_element_type=jnp.float32)

    @pl.when(j == 0)
    def _():
        acc_ref[...] = jnp.zeros_like(acc_ref)

    @pl.when(j < last)
    def _():
        acc_ref[...] += partial

    @pl.when(j == last)
    def _():
        # Fold the last partial straight into the output write: saves one
        # (tm, d_pad) f32 accumulator store + reload per token tile.
        o_ref[...] = (acc_ref[...] + partial + b2_ref[...]).astype(o_ref.dtype)


# ----------------------------- wrapper -------------------------------------- #


def prepare_params(w1, b1, w2, b2, matmul_dtype=jnp.bfloat16):
    """One-time weight preparation (pad feature dims to lane multiples of 128
    and cast to the MXU dtype) — hoisted out of the per-call hot path so the
    full-weight pad/cast HBM traffic is not paid on every forward."""
    input_dim, hidden_dim = w1.shape
    d_pad = _round_up(input_dim, 128)
    h_pad = _round_up(hidden_dim, 128)
    w1_p = jnp.pad(w1, ((0, d_pad - input_dim), (0, h_pad - hidden_dim))).astype(matmul_dtype)
    w2_p = jnp.pad(w2, ((0, h_pad - hidden_dim), (0, d_pad - input_dim))).astype(matmul_dtype)
    b1_p = jnp.pad(b1, (0, h_pad - hidden_dim)).astype(jnp.float32).reshape(1, h_pad)
    b2_p = jnp.pad(b2, (0, d_pad - input_dim)).astype(jnp.float32).reshape(1, d_pad)
    return dict(w1=w1_p, b1=b1_p, w2=w2_p, b2=b2_p,
                input_dim=input_dim, hidden_dim=hidden_dim,
                d_pad=d_pad, h_pad=h_pad, matmul_dtype=matmul_dtype)


def mlp_forward(x, params, *, force_path=None, max_tm=None, max_th=None):
    """x: [..., input_dim] -> [..., input_dim]."""
    matmul_dtype = params["matmul_dtype"]
    input_dim = params["input_dim"]
    d_pad, h_pad = params["d_pad"], params["h_pad"]
    w1_p, b1_p, w2_p, b2_p = params["w1"], params["b1"], params["w2"], params["b2"]

    orig_shape = x.shape
    x2d = x.reshape(-1, input_dim)
    m = x2d.shape[0]

    in_isz = jnp.dtype(matmul_dtype).itemsize
    out_dtype = x.dtype
    out_isz = jnp.dtype(out_dtype).itemsize

    capacity = _vmem_capacity_bytes()
    budget = int(capacity * 0.8)                 # headroom for Mosaic internals
    num_cores = _num_cores_guess()

    weights_bytes = 2 * d_pad * h_pad * in_isz   # W1 + W2 (padded, bf16)

    if force_path is None:
        # Fast path when double-buffered weights fit in ~half the VMEM budget.
        use_resident = 2 * weights_bytes <= budget // 2
    else:
        use_resident = (force_path == "resident")

    if use_resident:
        per_row = 2 * d_pad * in_isz + 2 * d_pad * out_isz + 2 * h_pad * 4
        tm_cap = ((budget - 2 * weights_bytes) // per_row) // 128 * 128
        tm_cap = max(128, min(512, tm_cap))
        if max_tm is not None:
            tm_cap = min(tm_cap, max_tm)
        tm, m_pad = _choose_token_tile(m, tm_cap, num_cores)

        footprint = 2 * weights_bytes + 2 * (h_pad + d_pad) * 4 + tm * per_row
        vmem_limit = min(int(capacity * 0.85),
                         max(32 * 1024 * 1024, footprint + (4 << 20)))

        cost = pl.CostEstimate(
            flops=4 * m_pad * d_pad * h_pad,
            transcendentals=m_pad * h_pad,
            bytes_accessed=(m_pad * d_pad * (in_isz + out_isz)
                            + weights_bytes                 # weights fetched once
                            + (h_pad + d_pad) * 4),
        )

        x_p = jnp.pad(x2d, ((0, m_pad - m), (0, d_pad - input_dim))).astype(matmul_dtype)

        out = pl.pallas_call(
            mlp_resident_kernel,
            out_shape=jax.ShapeDtypeStruct((m_pad, d_pad), out_dtype),
            grid_spec=pltpu.PrefetchScalarGridSpec(
                num_scalar_prefetch=0,
                grid=(m_pad // tm,),
                in_specs=[
                    pl.BlockSpec((tm, d_pad), lambda i: (i, 0)),      # x (streamed)
                    pl.BlockSpec((d_pad, h_pad), lambda i: (0, 0)),   # W1 (resident)
                    pl.BlockSpec((1, h_pad), lambda i: (0, 0)),       # b1
                    pl.BlockSpec((h_pad, d_pad), lambda i: (0, 0)),   # W2 (resident)
                    pl.BlockSpec((1, d_pad), lambda i: (0, 0)),       # b2
                ],
                out_specs=pl.BlockSpec((tm, d_pad), lambda i: (i, 0)),
            ),
            compiler_params=pltpu.CompilerParams(
                dimension_semantics=("parallel",),
                vmem_limit_bytes=vmem_limit,
            ),
            cost_estimate=cost,
        )(x_p, w1_p, b1_p, w2_p, b2_p)
    else:
        # Hidden-reduction path: pick (th, tm) from the VMEM budget; maximize
        # tm (arithmetic intensity ~= tm FLOPs per weight byte), bucketed so a
        # larger th (fewer reduction steps) wins ties.
        tm_target = 1024
        best = None
        for th_c in (512, 256, 128):
            if th_c > h_pad or h_pad % th_c != 0:
                continue
            if max_th is not None and th_c > max_th:
                continue
            fixed = 2 * 2 * d_pad * th_c * in_isz            # W1 + W2 tiles, dbl-buffered
            per_row = (2 * d_pad * in_isz                    # x tile (resident over j)
                       + 2 * d_pad * out_isz                 # out tile
                       + d_pad * 4                           # f32 accumulator scratch
                       + 2 * th_c * 4)                       # live f32 h / fused slab
            avail = budget - fixed
            if avail < 128 * per_row:
                continue
            tm_cap = min(tm_target, (avail // per_row) // 128 * 128)
            if max_tm is not None:
                tm_cap = min(tm_cap, max_tm)
            key = (min(tm_cap, tm_target) // 256, th_c, tm_cap)
            if best is None or key > best[0]:
                best = (key, th_c, tm_cap, per_row, fixed)
        if best is None:
            th, tm_cap = 128, 128
            fixed = 4 * d_pad * th * in_isz
            per_row = 2 * d_pad * in_isz + 2 * d_pad * out_isz + d_pad * 4 + 2 * th * 4
        else:
            _, th, tm_cap, per_row, fixed = best
        tm, m_pad = _choose_token_tile(m, tm_cap, num_cores)

        footprint = fixed + 2 * (th + d_pad) * 4 + tm * per_row
        vmem_limit = min(int(capacity * 0.85),
                         max(32 * 1024 * 1024, footprint + (4 << 20)))

        n_token_tiles = m_pad // tm
        cost = pl.CostEstimate(
            flops=4 * m_pad * d_pad * h_pad,
            transcendentals=m_pad * h_pad,
            bytes_accessed=(m_pad * d_pad * (in_isz + out_isz)
                            + n_token_tiles * weights_bytes  # weights re-fetched per token tile
                            + (h_pad + d_pad) * 4),
        )

        x_p = jnp.pad(x2d, ((0, m_pad - m), (0, d_pad - input_dim))).astype(matmul_dtype)

        out = pl.pallas_call(
            mlp_reduction_kernel,
            out_shape=jax.ShapeDtypeStruct((m_pad, d_pad), out_dtype),
            grid_spec=pltpu.PrefetchScalarGridSpec(
                num_scalar_prefetch=0,
                grid=(m_pad // tm, h_pad // th),
                in_specs=[
                    pl.BlockSpec((tm, d_pad), lambda i, j: (i, 0)),   # x (resident over j)
                    pl.BlockSpec((d_pad, th), lambda i, j: (0, j)),   # W1 slab
                    pl.BlockSpec((1, th), lambda i, j: (0, j)),       # b1 slab
                    pl.BlockSpec((th, d_pad), lambda i, j: (j, 0)),   # W2 slab
                    pl.BlockSpec((1, d_pad), lambda i, j: (0, 0)),    # b2
                ],
                out_specs=pl.BlockSpec((tm, d_pad), lambda i, j: (i, 0)),
                scratch_shapes=[pltpu.VMEM((tm, d_pad), jnp.float32)],
            ),
            compiler_params=pltpu.CompilerParams(
                dimension_semantics=("parallel", "arbitrary"),
                vmem_limit_bytes=vmem_limit,
            ),
            cost_estimate=cost,
        )(x_p, w1_p, b1_p, w2_p, b2_p)

    out = out[:m, :input_dim]
    return out.reshape(orig_shape)


# ----------------------------- test harness --------------------------------- #


def init_params(key, input_dim, hidden_dim):
    # torch.nn.Linear-style init (uniform +/- 1/sqrt(fan_in)); stored transposed
    # as [in, out] for the kernel.
    k1, k2, k3, k4 = jax.random.split(key, 4)
    bound1 = 1.0 / math.sqrt(input_dim)
    bound2 = 1.0 / math.sqrt(hidden_dim)
    w1 = jax.random.uniform(k1, (input_dim, hidden_dim), jnp.float32, -bound1, bound1)
    b1 = jax.random.uniform(k2, (hidden_dim,), jnp.float32, -bound1, bound1)
    w2 = jax.random.uniform(k3, (hidden_dim, input_dim), jnp.float32, -bound2, bound2)
    b2 = jax.random.uniform(k4, (input_dim,), jnp.float32, -bound2, bound2)
    return w1, b1, w2, b2


def reference_forward(x, w1, b1, w2, b2):
    h = x @ w1 + b1
    fused = _gelu_tanh(h) * h        # gate * up, exactly as the torch module
    return fused @ w2 + b2


if __name__ == "__main__":
    key = jax.random.PRNGKey(0)
    kx1, kp1, kx2, kp2 = jax.random.split(key, 4)

    # ---- Test 1: default (weight-resident) path, small shapes ----
    batch, seq, input_dim, hidden_dim = 2, 8, 32, 64
    x1 = jax.random.normal(kx1, (batch, seq, input_dim), dtype=jnp.float32)
    w1, b1, w2, b2 = init_params(kp1, input_dim, hidden_dim)
    params1 = prepare_params(w1, b1, w2, b2)
    out1 = jax.block_until_ready(mlp_forward(x1, params1))
    ref1 = reference_forward(x1, w1, b1, w2, b2)
    assert out1.shape == (batch, seq, input_dim)
    assert jnp.allclose(out1, ref1, atol=5e-2, rtol=5e-2), "resident path mismatch"

    # ---- Test 2: force the hidden-reduction path (>1 step on each grid axis) ----
    batch2, seq2, input_dim2, hidden_dim2 = 4, 64, 32, 256
    x2 = jax.random.normal(kx2, (batch2, seq2, input_dim2), dtype=jnp.float32)
    w1b, b1b, w2b, b2b = init_params(kp2, input_dim2, hidden_dim2)
    params2 = prepare_params(w1b, b1b, w2b, b2b)
    out2 = jax.block_until_ready(
        mlp_forward(x2, params2, force_path="reduction", max_tm=128, max_th=128))
    ref2 = reference_forward(x2, w1b, b1b, w2b, b2b)
    assert out2.shape == (batch2, seq2, input_dim2)
    assert jnp.allclose(out2, ref2, atol=5e-2, rtol=5e-2), "reduction path mismatch"

    print("KERNEL_OK")
</pallas_src>

<mosaic_0001>
module attributes {stable_mosaic.version = 11 : i64} {
  func.func @mlp_resident_kernel(%arg0: i32, %arg1: memref<16x128xbf16, #tpu.memory_space<vmem>>, %arg2: memref<128x128xbf16, #tpu.memory_space<vmem>>, %arg3: memref<1x128xf32, #tpu.memory_space<vmem>>, %arg4: memref<128x128xbf16, #tpu.memory_space<vmem>>, %arg5: memref<1x128xf32, #tpu.memory_space<vmem>>, %arg6: memref<16x128xf32, #tpu.memory_space<vmem>>) attributes {dimension_semantics = [#tpu.dimension_semantics<parallel>], iteration_bounds = array<i64: 1>, scalar_prefetch = 0 : i64, scratch_operands = 0 : i64, tpu.core_type = #tpu.core_type<tc>, window_params = [{transform_indices = @transform_0, window_bounds = array<i64: 16, 128>}, {pipeline_mode = #tpu.pipeline_mode<synchronous>, transform_indices = @transform_1, window_bounds = array<i64: 128, 128>}, {pipeline_mode = #tpu.pipeline_mode<synchronous>, transform_indices = @transform_2, window_bounds = array<i64: 1, 128>}, {pipeline_mode = #tpu.pipeline_mode<synchronous>, transform_indices = @transform_3, window_bounds = array<i64: 128, 128>}, {pipeline_mode = #tpu.pipeline_mode<synchronous>, transform_indices = @transform_4, window_bounds = array<i64: 1, 128>}, {transform_indices = @transform_5, window_bounds = array<i64: 16, 128>}]} {
    %c0 = arith.constant 0 : index
    %c0_0 = arith.constant 0 : index
    %0 = vector.load %arg1[%c0, %c0_0] : memref<16x128xbf16, #tpu.memory_space<vmem>>, vector<16x128xbf16>
    %c0_1 = arith.constant 0 : index
    %c0_2 = arith.constant 0 : index
    %1 = vector.load %arg2[%c0_1, %c0_2] : memref<128x128xbf16, #tpu.memory_space<vmem>>, vector<128x128xbf16>
    %cst = arith.constant dense<0.000000e+00> : vector<16x128xf32>
    %2 = tpu.matmul %0, %1, %cst {dimension_numbers = #tpu.dot_dimension_numbers<[1], [0], [0], [1], [0, 0, 1, 1], [], []>} : vector<16x128xbf16>, vector<128x128xbf16>, vector<16x128xf32> -> vector<16x128xf32>
    %c0_3 = arith.constant 0 : index
    %c0_4 = arith.constant 0 : index
    %3 = vector.load %arg3[%c0_3, %c0_4] : memref<1x128xf32, #tpu.memory_space<vmem>>, vector<1x128xf32>
    %4 = vector.broadcast %3 : vector<1x128xf32> to vector<16x128xf32>
    %5 = arith.addf %2, %4 : vector<16x128xf32>
    %cst_5 = arith.constant 5.000000e-01 : f32
    %6 = vector.broadcast %cst_5 : f32 to vector<16x128xf32>
    %7 = arith.mulf %6, %5 : vector<16x128xf32>
    %cst_6 = arith.constant 4.471500e-02 : f32
    %8 = vector.broadcast %cst_6 : f32 to vector<16x128xf32>
    %9 = arith.mulf %8, %5 : vector<16x128xf32>
    %10 = arith.mulf %9, %5 : vector<16x128xf32>
    %11 = arith.mulf %10, %5 : vector<16x128xf32>
    %12 = arith.addf %5, %11 : vector<16x128xf32>
    %cst_7 = arith.constant 0.797884583 : f32
    %13 = vector.broadcast %cst_7 : f32 to vector<16x128xf32>
    %14 = arith.mulf %13, %12 : vector<16x128xf32>
    %15 = math.tanh %14 : vector<16x128xf32>
    %cst_8 = arith.constant 1.000000e+00 : f32
    %16 = vector.broadcast %cst_8 : f32 to vector<16x128xf32>
    %17 = arith.addf %16, %15 : vector<16x128xf32>
    %18 = arith.mulf %7, %17 : vector<16x128xf32>
    %19 = arith.mulf %18, %5 : vector<16x128xf32>
    %20 = arith.truncf %19 : vector<16x128xf32> to vector<16x128xbf16>
    %c0_9 = arith.constant 0 : index
    %c0_10 = arith.constant 0 : index
    %21 = vector.load %arg4[%c0_9, %c0_10] : memref<128x128xbf16, #tpu.memory_space<vmem>>, vector<128x128xbf16>
    %cst_11 = arith.constant dense<0.000000e+00> : vector<16x128xf32>
    %22 = tpu.matmul %20, %21, %cst_11 {dimension_numbers = #tpu.dot_dimension_numbers<[1], [0], [0], [1], [0, 0, 1, 1], [], []>} : vector<16x128xbf16>, vector<128x128xbf16>, vector<16x128xf32> -> vector<16x128xf32>
    %c0_12 = arith.constant 0 : index
    %c0_13 = arith.constant 0 : index
    %23 = vector.load %arg5[%c0_12, %c0_13] : memref<1x128xf32, #tpu.memory_space<vmem>>, vector<1x128xf32>
    %24 = vector.broadcast %23 : vector<1x128xf32> to vector<16x128xf32>
    %25 = arith.addf %22, %24 : vector<16x128xf32>
    %c0_14 = arith.constant 0 : index
    %c0_15 = arith.constant 0 : index
    %26 = vector.load %arg6[%c0_14, %c0_15] : memref<16x128xf32, #tpu.memory_space<vmem>>, vector<16x128xf32>
    tpu.vector_store %arg6[%c0_14, %c0_15], %25 {strides = array<i32>} : memref<16x128xf32, #tpu.memory_space<vmem>>, vector<16x128xf32>,
    return
  }
  func.func @transform_0(%arg0: i32) -> (i32, i32) {
    %c0_i32 = arith.constant 0 : i32
    %c0_i32_0 = arith.constant 0 : i32
    return %arg0, %c0_i32 : i32, i32
  }
  func.func @transform_1(%arg0: i32) -> (i32, i32) {
    %c0_i32 = arith.constant 0 : i32
    %c0_i32_0 = arith.constant 0 : i32
    %c0_i32_1 = arith.constant 0 : i32
    return %c0_i32, %c0_i32_0 : i32, i32
  }
  func.func @transform_2(%arg0: i32) -> (i32, i32) {
    %c0_i32 = arith.constant 0 : i32
    %c0_i32_0 = arith.constant 0 : i32
    %c0_i32_1 = arith.constant 0 : i32
    return %c0_i32, %c0_i32_0 : i32, i32
  }
  func.func @transform_3(%arg0: i32) -> (i32, i32) {
    %c0_i32 = arith.constant 0 : i32
    %c0_i32_0 = arith.constant 0 : i32
    %c0_i32_1 = arith.constant 0 : i32
    return %c0_i32, %c0_i32_0 : i32, i32
  }
  func.func @transform_4(%arg0: i32) -> (i32, i32) {
    %c0_i32 = arith.constant 0 : i32
    %c0_i32_0 = arith.constant 0 : i32
    %c0_i32_1 = arith.constant 0 : i32
    return %c0_i32, %c0_i32_0 : i32, i32
  }
  func.func @transform_5(%arg0: i32) -> (i32, i32) {
    %c0_i32 = arith.constant 0 : i32
    %c0_i32_0 = arith.constant 0 : i32
    return %arg0, %c0_i32 : i32, i32
  }
}

</mosaic_0001>

<bundles_post_ra>
// kernel: tpu_custom_call.1
= control target key start
LH: loop header
LB: loop body
LE: loop exit
PB: predicated region body
PF: predicated region fallthrough
CT: control target
= control target key end

     0   :  { %10 = vsyncpa [#allocation3], 0  ;;  %s648_s0 = inlined_call_operand.hbm [shape: bf16[16,128], index: 0, kind: input, shape index: {}]   ;;  %s649_s1 = inlined_call_operand.hbm [shape: bf16[128,128], index: 1, kind: input, shape index: {}]   ;;  %s650_s2 = inlined_call_operand.vmem [shape: f32[1,128], index: 2, kind: input, shape index: {}]   ;;  %s651_s3 = inlined_call_operand.hbm [shape: bf16[128,128], index: 3, kind: input, shape index: {}]   ;;  %s652_s4 = inlined_call_operand.vmem [shape: f32[1,128], index: 4, kind: input, shape index: {}]   ;;  %s653_s5 = inlined_call_operand.hbm [shape: f32[16,128], index: 5, kind: output, shape index: {}]  }
   0x1   :  { %11 = vsyncpa [#allocation6], 0 }
   0x2   :  { %12 = vsyncpa [#allocation4], 0  ;;  %s538_s18 = smov [#allocation5]   ;;  %s539_s20 = smov [#allocation2]  }
   0x3   :  { %s30_s19 = sshll.u32 %s538_s18, 4  ;;  %s18_s21 = sshll.u32 %s539_s20, 4  ;;  %s31_s19 = int_to_ptr.vmem [resolvable:$true] %s30_s19  ;;  %s578_s21 = int_to_ptr.vmem [resolvable:$true] %s18_s21 }
   0x4   :  { %s444_s24 = scalar_lea.hbm %s649_s1, 1024 }
   0x5   :  { %p445_p0 = scmp.ne.s32.totalorder %s649_s1, %s444_s24  ;;  %p448_p1 = scmp.lt.u32.totalorder %s444_s24, %s649_s1 }
   0x7   :  { %p450_p2 = pnand %p448_p1, %p445_p0 }
   0x9   :  { %453 = shalt.err (!%p450_p2)
}
   0xa   :  { %s454_s29 = scalar_lea.vmem %s31_s19, 1024  ;;  %p459_p4 = scmp.lt.s32.totalorder %s31_s19, %s31_s19 }
   0xb   :  { %p455_p3 = scmp.ne.s32.totalorder %s31_s19, %s454_s29  ;;  %p460_p5 = scmp.lt.s32.totalorder %s454_s29, %s454_s29 }
   0xd   :  { %p461_p6 = por %p460_p5, %p459_p4 }
   0xf   :  { %p462_p7 = pnand %p461_p6, %p455_p3 }
  0x11   :  { %465 = shalt.err (!%p462_p7)
}
  0x12   :  { %s540_s30 = smov 64   ;;  %s541_s6 = smov 4  }
  0x13   :  { %36 = dma.hbm_to_vmem [thread:$0]  %s649_s1, 1024, %s31_s19, [#allocation6], %s540_s30, %s540_s30, %s541_s6  }
  0x14   :  { %s466_s11 = scalar_lea.hbm %s648_s0, 128 }
  0x15   :  { %p467_p8 = scmp.ne.s32.totalorder %s648_s0, %s466_s11  ;;  %p470_p9 = scmp.lt.u32.totalorder %s466_s11, %s648_s0 }
  0x17   :  { %p472_p10 = pnand %p470_p9, %p467_p8 }
  0x19   :  { %475 = shalt.err (!%p472_p10)
}
  0x1a   :  { %s476_s16 = scalar_lea.vmem %s578_s21, 128  ;;  %p481_p12 = scmp.lt.s32.totalorder %s578_s21, %s578_s21 }
  0x1b   :  { %p477_p11 = scmp.ne.s32.totalorder %s578_s21, %s476_s16  ;;  %p482_p13 = scmp.lt.s32.totalorder %s476_s16, %s476_s16 }
  0x1d   :  { %p483_p0 = por %p482_p13, %p481_p12 }
  0x1f   :  { %p484_p1 = pnand %p483_p0, %p477_p11 }
  0x21   :  { %487 = shalt.err (!%p484_p1)
}
  0x22   :  { %24 = dma.hbm_to_vmem [thread:$0]  %s648_s0, 128, %s578_s21, [#allocation3], %s540_s30, %s540_s30, %s541_s6  }
  0x23   :  { %s542_s18 = smov [#allocation7]   ;;  %s488_s23 = scalar_lea.hbm %s651_s3, 1024 }
  0x24   :  { %s44_s19 = sshll.u32 %s542_s18, 4  ;;  %p489_p2 = scmp.ne.s32.totalorder %s651_s3, %s488_s23  ;;  %s45_s19 = int_to_ptr.vmem [resolvable:$true] %s44_s19 }
  0x25   :  { %p492_p3 = scmp.lt.u32.totalorder %s488_s23, %s651_s3 }
  0x27   :  { %p494_p4 = pnand %p492_p3, %p489_p2 }
  0x29   :  { %497 = shalt.err (!%p494_p4)
}
  0x2a   :  { %s498_s28 = scalar_lea.vmem %s45_s19, 1024  ;;  %p503_p6 = scmp.lt.s32.totalorder %s45_s19, %s45_s19 }
  0x2b   :  { %p499_p5 = scmp.ne.s32.totalorder %s45_s19, %s498_s28  ;;  %p504_p7 = scmp.lt.s32.totalorder %s498_s28, %s498_s28 }
  0x2d   :  { %p505_p8 = por %p504_p7, %p503_p6 }
  0x2f   :  { %p506_p9 = pnand %p505_p8, %p499_p5 }
  0x31   :  { %509 = shalt.err (!%p506_p9)
}
  0x32   :  { %50 = dma.hbm_to_vmem [thread:$0]  %s651_s3, 1024, %s45_s19, [#allocation6], %s540_s30, %s540_s30, %s541_s6  }
  0x33   :  { %532 = dma.done.wait [#allocation3], 128  }
  0x34   :  { %533 = vsyncadd [#allocation3], 4294967168 }
  0x35   :  { %534 = dma.done.wait [#allocation6], 2048  }
  0x36   :  { %535 = vsyncadd [#allocation6], 4294965248  ;;  %v543_v0 = vmov 0.0   ;;  %vm544_vm0 = vmmov 0   ;;  %v423_v1 = vld [vmem:[#allocation5] sm:$0xff]   ;;  %v424_v2 = vld [vmem:[#allocation5 + $0x8] sm:$0xff]  }
  0x37   :  { %373 = vmatprep.subr.bf16.mxu0 %v543_v0  ;;  %389 = vmatprep.mubr.msk.bf16.mxu0 %vm544_vm0, %v543_v0  ;;  %v425_v3 = vld [vmem:[#allocation5 + $0x10] sm:$0xff]   ;;  %v426_v4 = vld [vmem:[#allocation5 + $0x18] sm:$0xff]   ;;  %v427_v5 = vld [vmem:[#allocation5 + $0x20] sm:$0xff]   ;;  %s545_s6 = smov [#allocation8]  }
  0x38   :  { %393 = vmatprep.subr.bf16.mxu1 %v543_v0  ;;  %409 = vmatprep.mubr.msk.bf16.mxu1 %vm544_vm0, %v543_v0  ;;  %v428_v6 = vld [vmem:[#allocation5 + $0x28] sm:$0xff]   ;;  %v429_v7 = vld [vmem:[#allocation5 + $0x30] sm:$0xff]   ;;  %v430_v8 = vld [vmem:[#allocation5 + $0x38] sm:$0xff]   ;;  %s323_s7 = sshll.u32 %s545_s6, 4  ;;  %s324_s7 = int_to_ptr.vmem [resolvable:$true] %s323_s7 }
  0x39   :  { %374 = vmatpush3.bf16.msra.mxu0 %v423_v1  ;;  %v431_v9 = vld [vmem:[#allocation2] sm:$0xff]   ;;  %v432_v10 = vld [vmem:[#allocation7] sm:$0xff]   ;;  %v433_v11 = vld [vmem:[#allocation7 + $0x8] sm:$0xff]   ;;  %s510_s8 = scalar_lea.vmem %s324_s7, 256  ;;  %p515_p11 = scmp.lt.s32.totalorder %s324_s7, %s324_s7 }
  0x3a   :  { %375 = vmatprep.subr.bf16.mxu0 %v543_v0  ;;  %394 = vmatpush3.bf16.msra.mxu1 %v432_v10  ;;  %v434_v12 = vld [vmem:[#allocation7 + $0x10] sm:$0xff]   ;;  %v435_v13 = vld [vmem:[#allocation7 + $0x18] sm:$0xff]   ;;  %v436_v14 = vld [vmem:[#allocation7 + $0x20] sm:$0xff]   ;;  %p511_p10 = scmp.ne.s32.totalorder %s324_s7, %s510_s8  ;;  %p516_p12 = scmp.lt.s32.totalorder %s510_s8, %s510_s8 }
  0x3b   :  { %395 = vmatprep.subr.bf16.mxu1 %v543_v0  ;;  %v437_v15 = vld [vmem:[#allocation7 + $0x28] sm:$0xff]   ;;  %v438_v16 = vld [vmem:[#allocation7 + $0x30] sm:$0xff]   ;;  %v439_v17 = vld [vmem:[#allocation7 + $0x38] sm:$0xff]  }
  0x3c   :  { %v336_v18 = vld [vmem:[%s650_s2] ss:$0 sm:$0xff]  ;;  %p517_p13 = por %p516_p12, %p515_p11 }
  0x3d   :  { %376 = vmatpush3.bf16.msra.mxu0 %v424_v2  ;;  %v346_v46 = vld [vmem:[%s652_s4] ss:$0 sm:$0xff] }
  0x3e   :  { %377 = vmatprep.subr.bf16.mxu0 %v543_v0  ;;  %396 = vmatpush3.bf16.msra.mxu1 %v433_v11  ;;  %p518_p0 = pnand %p517_p13, %p511_p10 }
  0x3f   :  { %397 = vmatprep.subr.bf16.mxu1 %v543_v0 }
  0x41   :  { %378 = vmatpush3.bf16.msra.mxu0 %v425_v3 }
  0x42   :  { %379 = vmatprep.subr.bf16.mxu0 %v543_v0  ;;  %398 = vmatpush3.bf16.msra.mxu1 %v434_v12 }
  0x43   :  { %399 = vmatprep.subr.bf16.mxu1 %v543_v0 }
  0x45   :  { %380 = vmatpush3.bf16.msra.mxu0 %v426_v4 }
  0x46   :  { %381 = vmatprep.subr.bf16.mxu0 %v543_v0  ;;  %400 = vmatpush3.bf16.msra.mxu1 %v435_v13 }
  0x47   :  { %401 = vmatprep.subr.bf16.mxu1 %v543_v0 }
  0x49   :  { %382 = vmatpush3.bf16.msra.mxu0 %v427_v5 }
  0x4a   :  { %383 = vmatprep.subr.bf16.mxu0 %v543_v0  ;;  %402 = vmatpush3.bf16.msra.mxu1 %v436_v14 }
  0x4b   :  { %403 = vmatprep.subr.bf16.mxu1 %v543_v0 }
  0x4d   :  { %384 = vmatpush3.bf16.msra.mxu0 %v428_v6 }
  0x4e   :  { %385 = vmatprep.subr.bf16.mxu0 %v543_v0  ;;  %404 = vmatpush3.bf16.msra.mxu1 %v437_v15 }
  0x4f   :  { %405 = vmatprep.subr.bf16.mxu1 %v543_v0 }
  0x51   :  { %386 = vmatpush3.bf16.msra.mxu0 %v429_v7 }
  0x52   :  { %387 = vmatprep.subr.bf16.mxu0 %v543_v0  ;;  %406 = vmatpush3.bf16.msra.mxu1 %v438_v16 }
  0x53   :  { %407 = vmatprep.subr.bf16.mxu1 %v543_v0 }
  0x55   :  { %388 = vmatpush3.bf16.msra.mxu0 %v430_v8 }
  0x56   :  { %408 = vmatpush3.bf16.msra.mxu1 %v439_v17 }
  0x58   :  { %390 = vmatmul.mubr.bf16.vlgmr.msra.gmra.mrb[0].mxu0 %v431_v9 }
 0x12b   :  { %v176_v19 = vpop.f32.mrb[0].mxu0 }
 0x12c   :  { %v177_v20 = vadd.f32 %v336_v18, %v176_v19  ;;  %v391_v21 = vpop.f32.mrb[1].mxu0 }
 0x12d   :  { %v179_v22 = vpop.f32.mrb[2].mxu0 }
 0x12e   :  { %v185_v23 = vmul.f32 0.044715, %v177_v20  ;;  %v180_v24 = vadd.f32 %v336_v18, %v179_v22  ;;  %v392_v25 = vpop.f32.mrb[3].mxu0  ;;  %v183_v36 = vmul.f32 0.5, %v177_v20 }
 0x130   :  { %v186_v26 = vmul.f32 0.044715, %v180_v24  ;;  %v187_v27 = vmul.f32 %v185_v23, %v177_v20  ;;  %v184_v39 = vmul.f32 0.5, %v180_v24 }
 0x132   :  { %v188_v28 = vmul.f32 %v186_v26, %v180_v24  ;;  %v189_v29 = vmul.f32 %v187_v27, %v177_v20 }
 0x134   :  { %v190_v30 = vmul.f32 %v188_v28, %v180_v24  ;;  %v191_v31 = vadd.f32 %v189_v29, %v177_v20 }
 0x136   :  { %v192_v32 = vadd.f32 %v190_v30, %v180_v24  ;;  %v193_v33 = vmul.f32 0.7978846, %v191_v31 }
 0x138   :  { %v194_v34 = vmul.f32 0.7978846, %v192_v32  ;;  %440 = vtanh.f32 %v193_v33 }
 0x13a   :  { %442 = vtanh.f32 %v194_v34 }
 0x142   :  { %v441_v35 = vpop.eup %440 }
 0x143   :  { %v197_v37 = vadd.f32 1.0, %v441_v35 }
 0x144   :  { %v443_v38 = vpop.eup %442 }
 0x145   :  { %v198_v40 = vadd.f32 1.0, %v443_v38  ;;  %v199_v41 = vmul.f32 %v197_v37, %v183_v36 }
 0x147   :  { %v200_v42 = vmul.f32 %v198_v40, %v184_v39  ;;  %v201_v43 = vmul.f32 %v199_v41, %v177_v20 }
 0x149   :  { %v202_v44 = vmul.f32 %v200_v42, %v180_v24 }
 0x14b   :  { %v203_v45 = vpack.c.bf16 %v202_v44, %v201_v43 }
 0x14d   :  { %410 = vmatmul.mubr.bf16.vlgmr.msra.gmra.mrb[0].mxu1 %v203_v45 }
 0x220   :  { %v309_v47 = vpop.f32.mrb[0].mxu1 }
 0x221   :  { %v310_v48 = vadd.f32 %v346_v46, %v309_v47  ;;  %v411_v49 = vpop.f32.mrb[1].mxu1 }
 0x222   :  { %v312_v50 = vpop.f32.mrb[2].mxu1 }
 0x223   :  { %316 = vst [vmem:[#allocation8] sm:$0xff] %v310_v48  ;;  %v313_v51 = vadd.f32 %v346_v46, %v312_v50  ;;  %v412_v52 = vpop.f32.mrb[3].mxu1 }
 0x225   :  { %317 = vst [vmem:[#allocation8 + $0x8] sm:$0xff] %v313_v51 }
 0x226   :  { %521 = shalt.err (!%p518_p0)
}
 0x227   :  { %s522_s10 = scalar_lea.hbm %s653_s5, 256 }
 0x228   :  { %p523_p1 = scmp.ne.s32.totalorder %s653_s5, %s522_s10  ;;  %p526_p2 = scmp.lt.u32.totalorder %s522_s10, %s653_s5 }
 0x22a   :  { %p528_p3 = pnand %p526_p2, %p523_p1 }
 0x22c   :  { %531 = shalt.err (!%p528_p3)
}
 0x22d   :  { %s546_s15 = smov 128   ;;  %s547_s16 = smov 8  }
 0x22e   :  { %329 = dma.vmem_to_hbm [thread:$0]  %s324_s7, 256, %s653_s5, [#allocation4], %s546_s15, %s546_s15, %s547_s16  }
 0x22f   :  { %536 = dma.done.wait [#allocation4], 256  }
 0x230   :  { %537 = vsyncadd [#allocation4], 4294967040 }
 0x231   :  { %333 = vsyncpa [#allocation3], 1 }
 0x232   :  { %334 = vsyncpa [#allocation6], 1 }
 0x233   :  { %335 = vsyncpa [#allocation4], 1 }

</bundles_post_ra>
